<compile_context>
chip_gen: v6e
topology: v6e:2x2x1
jax: 0.10.0
libtpu: 0.0.40
codegen_flags: <defaults>
</compile_context>

<pallas_src>
import math

import jax
import jax.numpy as jnp
from jax.experimental import pallas as pl
from jax.experimental.pallas import tpu as pltpu

_NEG = -1e12  # PyTorch masked_fill value


def _round_up(x, m):
    return ((x + m - 1) // m) * m


def _tpu_generation():
    """Best-effort TPU generation (5, 6, 7, ...) from device_kind; None if unknown."""
    try:
        kind = jax.devices()[0].device_kind.lower()
    except Exception:
        return None
    for g in (7, 6, 5, 4, 3):
        if "v%d" % g in kind:
            return g
    return None


def _resident_spec(block_shape):
    """Constant-index (VMEM-resident) block; single-buffered when supported."""
    ndim = len(block_shape)
    index_map = lambda i, s: (0,) * ndim
    try:
        return pl.BlockSpec(block_shape, index_map, pipeline_mode=pl.Buffered(1))
    except (TypeError, AttributeError):  # older JAX without pipeline_mode/Buffered
        return pl.BlockSpec(block_shape, index_map)


def _choose_s_chunk(S, TB, H, itemsize=2, chunk_budget=2 * 1024 * 1024):
    """S-chunk size TS and (possibly padded) S.

    Whole-S when the bf16 encoder block is small (avoids extra grid-step
    overhead); otherwise the largest multiple-of-8 divisor of S within the
    VMEM budget; padding S only as a last resort.
    """
    if S * TB * H * itemsize <= chunk_budget:
        return S, S
    max_ts = max(8, (chunk_budget // (TB * H * itemsize)) // 8 * 8)
    for ts in range(max_ts, 7, -8):
        if S % ts == 0:
            return ts, S
    # TODO(synk): ragged last S-chunk (clamped index_map) would avoid this pad.
    return max_ts, _round_up(S, max_ts)


def _make_attn_kernel(ns, ts, tanh_dtype):
    """Build the kernel for `ns` S-chunks of `ts` rows each."""

    def kernel(h_ref, enc_ref, mbias_ref, wh_ref, we_ref, b_ref, v_ref,
               o_ref, hproj_ref):
        # h_ref    : (TB, H)      bf16 decoder hidden tile
        # enc_ref  : (TS, TB, H)  bf16 encoder chunk (time-major)
        # mbias_ref: (TS, TB)     f32 additive mask bias (0 / -1e12)
        # wh_ref   : (H, H)       bf16 attn-weight cols multiplying hidden (pre-T)
        # we_ref   : (H, H)       bf16 attn-weight cols multiplying encoder (pre-T)
        # b_ref    : (1, H)       f32 attn bias
        # v_ref    : (1, H)       f32 score weight
        # o_ref    : (S_pad, TB)  f32 energies -> softmax weights (resident block)
        # hproj_ref: (TB, H)      f32 scratch, persists across grid steps
        s = pl.program_id(1)
        TS, TB, H = enc_ref.shape

        # Hidden projection once per batch tile (replaces torch `repeat`).
        @pl.when(s == 0)
        def _():
            hproj_ref[...] = (
                jnp.dot(h_ref[...], wh_ref[...],
                        preferred_element_type=jnp.float32) + b_ref[...])

        # Encoder projection for this S-chunk: bf16 MXU, f32 accumulation.
        e_proj = jnp.dot(enc_ref[...].reshape(TS * TB, H), we_ref[...],
                         preferred_element_type=jnp.float32).reshape(TS, TB, H)

        pre = e_proj + hproj_ref[...][None, :, :]
        # bf16 tanh halves EUP work on v6e/v7x; f32 on chips without bf16 EUP.
        t = jnp.tanh(pre.astype(tanh_dtype))

        # Score contraction over H (f32 accumulation), then additive mask bias.
        # TODO(synk): if profiling shows this XLU lane-reduce on the critical
        # path, switch to an MXU matvec (reshape + dot with v^T of shape (H,1)).
        energies = jnp.sum(t.astype(jnp.float32) * v_ref[...], axis=-1)  # (TS, TB)
        energies = energies + mbias_ref[...]

        if ns == 1:
            o_ref[...] = energies
        else:
            start = pl.multiple_of(s * ts, ts)
            o_ref[pl.ds(start, ts), :] = energies

        # Masked, numerically-stable softmax over the full (resident) S axis,
        # done once on the last chunk; padded S rows carry -1e12 bias -> ~0.
        @pl.when(s == ns - 1)
        def _():
            e = o_ref[...]
            m = jnp.max(e, axis=0, keepdims=True)
            ex = jnp.exp(e - m)
            o_ref[...] = ex / jnp.sum(ex, axis=0, keepdims=True)

    return kernel


def prepare_attn_params(w_attn, b_attn, w_score):
    """One-time parameter prep, hoisted out of the per-step forward.

    w_attn : (H, 2H)  nn.Linear(2H, H) weight, PyTorch (out, in) layout
    b_attn : (H,)
    w_score: (1, H)   nn.Linear(H, 1, bias=False) weight

    Weights are pre-transposed and stored bf16 (MXU-native input format);
    bias / score vector stay f32 so the energy accumulation stays f32.
    """
    H = w_attn.shape[0]
    w = jnp.asarray(w_attn, jnp.float32)
    wh_t = w[:, :H].T.astype(jnp.bfloat16)   # multiplies hidden           (H, H)
    we_t = w[:, H:].T.astype(jnp.bfloat16)   # multiplies encoder_outputs  (H, H)
    b = jnp.asarray(b_attn, jnp.float32).reshape(1, H)
    v = jnp.asarray(w_score, jnp.float32).reshape(1, H)
    return wh_t, we_t, b, v


@jax.jit
def attn_forward(hidden, encoder_outputs, seq_mask, wh_t, we_t, b, v):
    """Attn.forward (batch_first=False), eval mode.

    hidden          : (1, B, H)
    encoder_outputs : (S, B, H)  any float dtype; fed to the kernel as bf16
    seq_mask        : (B, S) (nonzero = masked) or None
    returns         : (B, 1, S) float32
    """
    S, B, H = encoder_outputs.shape
    gen = _tpu_generation()
    tanh_dtype = jnp.bfloat16 if gen in (6, 7) else jnp.float32
    vmem_cap = (100 if gen in (5, 6) else 48) * 1024 * 1024

    # bf16 into the MXU (no f32 upcast of the dominant encoder stream);
    # accumulation / energies / softmax stay f32 inside the kernel.
    hid = jnp.asarray(hidden, jnp.bfloat16).reshape(B, H)
    enc = encoder_outputs.astype(jnp.bfloat16)

    # Mask as a precomputed additive bias (0 / -1e12), time-major; tiny array.
    if seq_mask is None:
        mask_bias = jnp.zeros((S, B), jnp.float32)
    else:
        mask_bias = jnp.where(jnp.asarray(seq_mask) != 0,
                              jnp.float32(_NEG), jnp.float32(0.0)).T   # (S, B)

    # Batch tiling: TB is a multiple of 8 and either 128 or the full padded
    # batch -> all BlockSpec lane/sublane constraints hold for every block.
    TB = min(_round_up(B, 8), 128)
    B_pad = _round_up(B, TB)
    # S tiling: bounds VMEM per step and overlaps DMA / MXU / EUP across chunks.
    TS, S_pad = _choose_s_chunk(S, TB, H)

    if B_pad != B or S_pad != S:
        # TODO(synk): ragged last tiles (clamped index_map + in-kernel masking)
        # would avoid this pad copy for large, 128-misaligned B.
        hid = jnp.pad(hid, ((0, B_pad - B), (0, 0)))
        enc = jnp.pad(enc, ((0, S_pad - S), (0, B_pad - B), (0, 0)))
        # -1e12 in padded rows/cols: padded S rows vanish from the softmax
        # denominator; padded batch columns give a benign uniform softmax that
        # is sliced off below.
        mask_bias = jnp.pad(mask_bias, ((0, S_pad - S), (0, B_pad - B)),
                            constant_values=_NEG)

    ns = S_pad // TS
    grid = (B_pad // TB, ns)
    kernel = _make_attn_kernel(ns, TS, tanh_dtype)

    # Rough VMEM budget: double-buffered inputs + resident weights + f32
    # temporaries, with 2x headroom, capped per-generation.
    vmem_est = (2 * TS * TB * H * 2            # encoder chunk (bf16, double-buf)
                + 2 * TB * H * 2               # hidden tile
                + 2 * TS * TB * 4              # mask bias chunk
                + 2 * (2 * H * H + 2 * H) * 2  # weights / bias / v
                + 2 * S_pad * TB * 4           # resident energies/output block
                + TB * H * 4                   # h_proj scratch
                + 4 * TS * TB * H * 4)         # f32 temporaries headroom
    vmem_limit = int(min(max(2 * vmem_est, 16 * 1024 * 1024), vmem_cap))

    flops = (2 * B_pad * H * H                 # hidden projection (once)
             + 2 * S_pad * B_pad * H * H       # encoder projection
             + 2 * S_pad * B_pad * H)          # score contraction
    transcendentals = S_pad * B_pad * H + S_pad * B_pad
    bytes_accessed = (2 * (B_pad * H + S_pad * B_pad * H + 2 * H * H)
                      + 4 * (2 * S_pad * B_pad + 2 * H))

    out_t = pl.pallas_call(
        kernel,
        out_shape=jax.ShapeDtypeStruct((S_pad, B_pad), jnp.float32),
        grid=grid,
        in_specs=[
            pl.BlockSpec((TB, H), lambda i, s: (i, 0)),          # hidden tile
            pl.BlockSpec((TS, TB, H), lambda i, s: (s, i, 0)),   # encoder chunk
            pl.BlockSpec((TS, TB), lambda i, s: (s, i)),         # mask bias chunk
            _resident_spec((H, H)),                              # W_h (resident)
            _resident_spec((H, H)),                              # W_e (resident)
            _resident_spec((1, H)),                              # bias (resident)
            _resident_spec((1, H)),                              # score v (resident)
        ],
        # Energies block stays VMEM-resident across all S-chunks of a batch
        # tile (constant index along the "arbitrary" s axis); written back to
        # HBM once per batch tile after the final softmax.
        out_specs=pl.BlockSpec((S_pad, TB), lambda i, s: (0, i)),
        scratch_shapes=[pltpu.VMEM((TB, H), jnp.float32)],       # h_proj
        compiler_params=pltpu.CompilerParams(
            dimension_semantics=("parallel", "arbitrary"),
            vmem_limit_bytes=vmem_limit),
        cost_estimate=pl.CostEstimate(
            flops=flops,
            transcendentals=transcendentals,
            bytes_accessed=bytes_accessed),
    )(hid, enc, mask_bias, wh_t, we_t, b, v)

    # (S_pad, B_pad) -> (B, 1, S); only B*S floats are touched here.
    return out_t[:S, :B].T[:, None, :]


def _init_linear(key, out_features, in_features, bias=True):
    """Deterministic nn.Linear-style init: U(-1/sqrt(in), 1/sqrt(in))."""
    kw, kb = jax.random.split(key)
    bound = 1.0 / math.sqrt(in_features)
    w = jax.random.uniform(kw, (out_features, in_features), jnp.float32,
                           minval=-bound, maxval=bound)
    if bias:
        b = jax.random.uniform(kb, (out_features,), jnp.float32,
                               minval=-bound, maxval=bound)
        return w, b
    return w


def _reference(hidden, encoder_outputs, seq_mask, w_attn, b_attn, w_score):
    """Pure-JAX f32 transcription of the PyTorch forward."""
    S, B, H = encoder_outputs.shape
    hid = jnp.broadcast_to(hidden, (S, B, H))
    energy_in = jnp.concatenate([hid, encoder_outputs], axis=2).reshape(-1, 2 * H)
    e = jnp.tanh(energy_in @ w_attn.T + b_attn) @ w_score.T   # (S*B, 1)
    e = e.reshape(S, B).T                                     # (B, S)
    if seq_mask is not None:
        e = jnp.where(seq_mask != 0, _NEG, e)
    att = jax.nn.softmax(e, axis=1)
    return att[:, None, :]                                    # (B, 1, S)


if __name__ == "__main__":
    hidden_size = 32
    seq_len = 8
    batch = 2

    key = jax.random.PRNGKey(0)
    k_h, k_e, k_w, k_s = jax.random.split(key, 4)

    hidden = jax.random.normal(k_h, (1, batch, hidden_size), jnp.float32)
    encoder_outputs = jax.random.normal(k_e, (seq_len, batch, hidden_size),
                                        jnp.float32)

    # seq_mask: nonzero marks padded positions (row 0 full length, row 1 len=5)
    lengths = jnp.array([seq_len, 5], dtype=jnp.int32)
    positions = jnp.arange(seq_len)[None, :]
    seq_mask = (positions >= lengths[:, None]).astype(jnp.float32)   # (B, S)

    # bidirectional_encoder=True -> attn: Linear(2H, H); score: Linear(H, 1, no bias)
    w_attn, b_attn = _init_linear(k_w, hidden_size, 2 * hidden_size)
    w_score = _init_linear(k_s, 1, hidden_size, bias=False)

    params = prepare_attn_params(w_attn, b_attn, w_score)
    out = attn_forward(hidden, encoder_outputs, seq_mask, *params)
    out = jax.block_until_ready(out)

    ref = _reference(hidden, encoder_outputs, seq_mask, w_attn, b_attn, w_score)
    assert out.shape == (batch, 1, seq_len), out.shape
    # bf16 encoder/weights/tanh inside the kernel -> compare vs f32 reference
    # with a bf16-appropriate tolerance (energies/softmax are accumulated f32).
    assert jnp.allclose(out, ref, atol=1e-2, rtol=1e-2), "mismatch vs. JAX reference"

    print("KERNEL_OK")
</pallas_src>

<mosaic_0001>
module attributes {stable_mosaic.version = 11 : i64} {
  func.func @kernel(%arg0: i32, %arg1: i32, %arg2: memref<8x32xbf16, #tpu.memory_space<vmem>>, %arg3: memref<8x8x32xbf16, #tpu.memory_space<vmem>>, %arg4: memref<8x8xf32, #tpu.memory_space<vmem>>, %arg5: memref<32x32xbf16, #tpu.memory_space<vmem>>, %arg6: memref<32x32xbf16, #tpu.memory_space<vmem>>, %arg7: memref<1x32xf32, #tpu.memory_space<vmem>>, %arg8: memref<1x32xf32, #tpu.memory_space<vmem>>, %arg9: memref<8x8xf32, #tpu.memory_space<vmem>>, %arg10: memref<8x32xf32, #tpu.memory_space<vmem>>) attributes {dimension_semantics = [#tpu.dimension_semantics<parallel>, #tpu.dimension_semantics<arbitrary>], iteration_bounds = array<i64: 1, 1>, scalar_prefetch = 0 : i64, scratch_operands = 1 : i64, tpu.core_type = #tpu.core_type<tc>, window_params = [{transform_indices = @transform_0, window_bounds = array<i64: 8, 32>}, {transform_indices = @transform_1, window_bounds = array<i64: 8, 8, 32>}, {transform_indices = @transform_2, window_bounds = array<i64: 8, 8>}, {pipeline_mode = #tpu.pipeline_mode<synchronous>, transform_indices = @transform_3, window_bounds = array<i64: 32, 32>}, {pipeline_mode = #tpu.pipeline_mode<synchronous>, transform_indices = @transform_4, window_bounds = array<i64: 32, 32>}, {pipeline_mode = #tpu.pipeline_mode<synchronous>, transform_indices = @transform_5, window_bounds = array<i64: 1, 32>}, {pipeline_mode = #tpu.pipeline_mode<synchronous>, transform_indices = @transform_6, window_bounds = array<i64: 1, 32>}, {transform_indices = @transform_7, window_bounds = array<i64: 8, 8>}]} {
    %c0_i32 = arith.constant 0 : i32
    %0 = arith.cmpi eq, %arg1, %c0_i32 : i32
    %1 = arith.extui %0 : i1 to i32
    %c0_i32_0 = arith.constant 0 : i32
    %2 = arith.cmpi ne, %1, %c0_i32_0 : i32
    scf.if %2 {
      %c0_16 = arith.constant 0 : index
      %c0_17 = arith.constant 0 : index
      %24 = vector.load %arg2[%c0_16, %c0_17] : memref<8x32xbf16, #tpu.memory_space<vmem>>, vector<8x32xbf16>
      %c0_18 = arith.constant 0 : index
      %c0_19 = arith.constant 0 : index
      %25 = vector.load %arg5[%c0_18, %c0_19] : memref<32x32xbf16, #tpu.memory_space<vmem>>, vector<32x32xbf16>
      %cst_20 = arith.constant dense<0.000000e+00> : vector<8x32xf32>
      %26 = tpu.matmul %24, %25, %cst_20 {dimension_numbers = #tpu.dot_dimension_numbers<[1], [0], [0], [1], [0, 0, 1, 1], [], []>} : vector<8x32xbf16>, vector<32x32xbf16>, vector<8x32xf32> -> vector<8x32xf32>
      %c0_21 = arith.constant 0 : index
      %c0_22 = arith.constant 0 : index
      %27 = vector.load %arg7[%c0_21, %c0_22] : memref<1x32xf32, #tpu.memory_space<vmem>>, vector<1x32xf32>
      %28 = vector.broadcast %27 : vector<1x32xf32> to vector<8x32xf32>
      %29 = arith.addf %26, %28 : vector<8x32xf32>
      %c0_23 = arith.constant 0 : index
      %c0_24 = arith.constant 0 : index
      %30 = vector.load %arg10[%c0_23, %c0_24] : memref<8x32xf32, #tpu.memory_space<vmem>>, vector<8x32xf32>
      tpu.vector_store %arg10[%c0_23, %c0_24], %29 {strides = array<i32>} : memref<8x32xf32, #tpu.memory_space<vmem>>, vector<8x32xf32>,
    } else {
    }
    %c0 = arith.constant 0 : index
    %c0_1 = arith.constant 0 : index
    %c0_2 = arith.constant 0 : index
    %3 = vector.load %arg3[%c0, %c0_1, %c0_2] : memref<8x8x32xbf16, #tpu.memory_space<vmem>>, vector<8x8x32xbf16>
    %4 = vector.shape_cast %3 : vector<8x8x32xbf16> to vector<64x32xbf16>
    %c0_3 = arith.constant 0 : index
    %c0_4 = arith.constant 0 : index
    %5 = vector.load %arg6[%c0_3, %c0_4] : memref<32x32xbf16, #tpu.memory_space<vmem>>, vector<32x32xbf16>
    %cst = arith.constant dense<0.000000e+00> : vector<64x32xf32>
    %6 = tpu.matmul %4, %5, %cst {dimension_numbers = #tpu.dot_dimension_numbers<[1], [0], [0], [1], [0, 0, 1, 1], [], []>} : vector<64x32xbf16>, vector<32x32xbf16>, vector<64x32xf32> -> vector<64x32xf32>
    %7 = vector.shape_cast %6 : vector<64x32xf32> to vector<8x8x32xf32>
    %c0_5 = arith.constant 0 : index
    %c0_6 = arith.constant 0 : index
    %8 = vector.load %arg10[%c0_5, %c0_6] : memref<8x32xf32, #tpu.memory_space<vmem>>, vector<8x32xf32>
    %9 = vector.shape_cast %8 : vector<8x32xf32> to vector<1x8x32xf32>
    %10 = vector.broadcast %9 : vector<1x8x32xf32> to vector<8x8x32xf32>
    %11 = arith.addf %7, %10 : vector<8x8x32xf32>
    %12 = math.tanh %11 : vector<8x8x32xf32>
    %c0_7 = arith.constant 0 : index
    %c0_8 = arith.constant 0 : index
    %13 = vector.load %arg8[%c0_7, %c0_8] : memref<1x32xf32, #tpu.memory_space<vmem>>, vector<1x32xf32>
    %14 = vector.shape_cast %13 : vector<1x32xf32> to vector<1x1x32xf32>
    %15 = vector.broadcast %14 : vector<1x1x32xf32> to vector<8x8x32xf32>
    %16 = arith.mulf %12, %15 : vector<8x8x32xf32>
    %cst_9 = arith.constant dense<0.000000e+00> : vector<8x8xf32>
    %17 = vector.multi_reduction <add>, %16, %cst_9 [2] : vector<8x8x32xf32> to vector<8x8xf32>
    %c0_10 = arith.constant 0 : index
    %c0_11 = arith.constant 0 : index
    %18 = vector.load %arg4[%c0_10, %c0_11] : memref<8x8xf32, #tpu.memory_space<vmem>>, vector<8x8xf32>
    %19 = arith.addf %17, %18 : vector<8x8xf32>
    %c0_12 = arith.constant 0 : index
    %c0_13 = arith.constant 0 : index
    %20 = vector.load %arg9[%c0_12, %c0_13] : memref<8x8xf32, #tpu.memory_space<vmem>>, vector<8x8xf32>
    tpu.vector_store %arg9[%c0_12, %c0_13], %19 {strides = array<i32>} : memref<8x8xf32, #tpu.memory_space<vmem>>, vector<8x8xf32>,
    %c0_i32_14 = arith.constant 0 : i32
    %21 = arith.cmpi eq, %arg1, %c0_i32_14 : i32
    %22 = arith.extui %21 : i1 to i32
    %c0_i32_15 = arith.constant 0 : i32
    %23 = arith.cmpi ne, %22, %c0_i32_15 : i32
    scf.if %23 {
      %c0_16 = arith.constant 0 : index
      %c0_17 = arith.constant 0 : index
      %24 = vector.load %arg9[%c0_16, %c0_17] : memref<8x8xf32, #tpu.memory_space<vmem>>, vector<8x8xf32>
      %cst_18 = arith.constant dense<0xFF800000> : vector<8xf32>
      %25 = vector.multi_reduction <maximumf>, %24, %cst_18 [0] : vector<8x8xf32> to vector<8xf32>
      %26 = vector.shape_cast %25 : vector<8xf32> to vector<1x8xf32>
      %27 = vector.broadcast %26 : vector<1x8xf32> to vector<8x8xf32>
      %28 = arith.subf %24, %27 : vector<8x8xf32>
      %29 = math.exp %28 : vector<8x8xf32>
      %cst_19 = arith.constant dense<0.000000e+00> : vector<8xf32>
      %30 = vector.multi_reduction <add>, %29, %cst_19 [0] : vector<8x8xf32> to vector<8xf32>
      %31 = vector.shape_cast %30 : vector<8xf32> to vector<1x8xf32>
      %32 = vector.broadcast %31 : vector<1x8xf32> to vector<8x8xf32>
      %33 = arith.divf %29, %32 : vector<8x8xf32>
      %c0_20 = arith.constant 0 : index
      %c0_21 = arith.constant 0 : index
      %34 = vector.load %arg9[%c0_20, %c0_21] : memref<8x8xf32, #tpu.memory_space<vmem>>, vector<8x8xf32>
      tpu.vector_store %arg9[%c0_20, %c0_21], %33 {strides = array<i32>} : memref<8x8xf32, #tpu.memory_space<vmem>>, vector<8x8xf32>,
    } else {
    }
    return
  }
  func.func @transform_0(%arg0: i32, %arg1: i32) -> (i32, i32) {
    %c0_i32 = arith.constant 0 : i32
    %c0_i32_0 = arith.constant 0 : i32
    return %arg0, %c0_i32 : i32, i32
  }
  func.func @transform_1(%arg0: i32, %arg1: i32) -> (i32, i32, i32) {
    %c0_i32 = arith.constant 0 : i32
    %c0_i32_0 = arith.constant 0 : i32
    return %arg1, %arg0, %c0_i32 : i32, i32, i32
  }
  func.func @transform_2(%arg0: i32, %arg1: i32) -> (i32, i32) {
    %c0_i32 = arith.constant 0 : i32
    return %arg1, %arg0 : i32, i32
  }
  func.func @transform_3(%arg0: i32, %arg1: i32) -> (i32, i32) {
    %c0_i32 = arith.constant 0 : i32
    %c0_i32_0 = arith.constant 0 : i32
    %c0_i32_1 = arith.constant 0 : i32
    return %c0_i32, %c0_i32_0 : i32, i32
  }
  func.func @transform_4(%arg0: i32, %arg1: i32) -> (i32, i32) {
    %c0_i32 = arith.constant 0 : i32
    %c0_i32_0 = arith.constant 0 : i32
    %c0_i32_1 = arith.constant 0 : i32
    return %c0_i32, %c0_i32_0 : i32, i32
  }
  func.func @transform_5(%arg0: i32, %arg1: i32) -> (i32, i32) {
    %c0_i32 = arith.constant 0 : i32
    %c0_i32_0 = arith.constant 0 : i32
    %c0_i32_1 = arith.constant 0 : i32
    return %c0_i32, %c0_i32_0 : i32, i32
  }
  func.func @transform_6(%arg0: i32, %arg1: i32) -> (i32, i32) {
    %c0_i32 = arith.constant 0 : i32
    %c0_i32_0 = arith.constant 0 : i32
    %c0_i32_1 = arith.constant 0 : i32
    return %c0_i32, %c0_i32_0 : i32, i32
  }
  func.func @transform_7(%arg0: i32, %arg1: i32) -> (i32, i32) {
    %c0_i32 = arith.constant 0 : i32
    %c0_i32_0 = arith.constant 0 : i32
    return %c0_i32, %arg0 : i32, i32
  }
}

</mosaic_0001>

<bundles_post_ra>
// kernel: attn_forward.1
= control target key start
LH: loop header
LB: loop body
LE: loop exit
PB: predicated region body
PF: predicated region fallthrough
CT: control target
= control target key end

     0   :  { %v280_v0 = vlaneseq  ;;  %v540_v1 = vmov 0.0   ;;  %vm541_vm0 = vmmov 0   ;;  %vm55_vm1 = vcmask 261120   ;;  %s669_s3 = inlined_call_operand.vmem [shape: bf16[32,32], index: 3, kind: input, shape index: {}]   ;;  %s670_s4 = inlined_call_operand.vmem [shape: bf16[32,32], index: 4, kind: input, shape index: {}]   ;;  %s671_s1 = inlined_call_operand.vmem [shape: bf16[8,8,32], index: 1, kind: input, shape index: {}]   ;;  %s672_s0 = inlined_call_operand.vmem [shape: bf16[8,32], index: 0, kind: input, shape index: {}]   ;;  %s673_s2 = inlined_call_operand.vmem [shape: f32[8,8], index: 2, kind: input, shape index: {}]   ;;  %s674_s5 = inlined_call_operand.vmem [shape: f32[1,32], index: 5, kind: input, shape index: {}]   ;;  %s675_s6 = inlined_call_operand.vmem [shape: f32[1,32], index: 6, kind: input, shape index: {}]   ;;  %s676_s7 = inlined_call_operand.vmem [shape: f32[8,8], index: 7, kind: output, shape index: {}]  }
   0x1   :  { %487 = vmatprep.subr.bf16.mxu0 %v540_v1  ;;  %v512_v2 = vld [vmem:[%s669_s3 + $0x8] sm:$0xff]   ;;  %491 = vmatprep.mubr.msk.bf16.mxu0 %vm541_vm0, %v540_v1  ;;  %v514_v5 = vld [vmem:[%s669_s3] sm:$0xff]   ;;  %v518_v12 = vld [vmem:[%s671_s1 + $0x10] sm:$0xff]   ;;  %vm418_vm2 = vcmask 1041409   ;;  %vm420_vm3 = vcmask 1042434   ;;  %vm422_vm4 = vcmask 1043459  }
   0x2   :  { %v513_v3 = vld [vmem:[%s670_s4 + $0x8] sm:$0xff]   ;;  %v590_v4 = vshrl.u32 %v280_v0, 7  ;;  %488 = vmatpush3.bf16.msra.mxu0 %v512_v2  ;;  %v515_v6 = vld [vmem:[%s670_s4] sm:$0xff]   ;;  %v519_v21 = vld [vmem:[%s671_s1 + $0x18] sm:$0xff]   ;;  %vm424_vm5 = vcmask 1044484   ;;  %vm426_vm6 = vcmask 1045509  }
   0x3   :  { %495 = vmatprep.subr.bf16.mxu1 %v513_v3  ;;  %489 = vmatprep.subr.bf16.mxu0 %v540_v1  ;;  %v516_v7 = vld [vmem:[%s671_s1] sm:$0xff]   ;;  %v517_v10 = vld [vmem:[%s671_s1 + $0x8] sm:$0xff]   ;;  %vm428_vm7 = vcmask 1046534   ;;  %vm430_vm8 = vcmask 1047559   ;;  %vm433_vm9 = vcmask 64512  }
   0x4   :  { %496 = vmatpush3.bf16.msra.mxu1 %v513_v3  ;;  %v289_v8 = vsub.s32 1, %v590_v4  ;;  %v31_v9 = vld [vmem:[%s672_s0] sm:$0xf]  ;;  %499 = vmatprep.mubr.msk.bf16.mxu1 %vm55_vm1, %v516_v7  ;;  %v296_v11 = vsub.s32 2, %v590_v4  ;;  %v282_v14 = vsub.s32 0, %v590_v4  ;;  %v310_v15 = vsub.s32 4, %v590_v4 }
   0x5   :  { %497 = vmatprep.subr.bf16.mxu1 %v515_v6  ;;  %v616_v13 = vld [vmem:[%s673_s2] sm:$0xff]  ;;  %v303_v19 = vsub.s32 3, %v590_v4  ;;  %v317_v23 = vsub.s32 5, %v590_v4 }
   0x6   :  { %490 = vmatpush3.bf16.msra.mxu0 %v514_v5  ;;  %v290_v16 = vrot.slane %v616_v13, %v289_v8  ;;  %v283_v17 = vrot.slane %v616_v13, %v282_v14  ;;  %v297_v18 = vrot.slane %v616_v13, %v296_v11  ;;  %v311_v20 = vrot.slane %v616_v13, %v310_v15  ;;  %v463_v25 = vld [vmem:[%s674_s5] ss:$0 sm:$0xff] }
   0x7   :  { %v304_v22 = vrot.slane %v616_v13, %v303_v19  ;;  %v318_v24 = vrot.slane %v616_v13, %v317_v23  ;;  %v477_v48 = vld [vmem:[%s675_s6] ss:$0 sm:$0xff]  ;;  %v542_v11 = vmov 0   ;;  %v324_v15 = vsub.s32 6, %v590_v4 }
   0x8   :  { %498 = vmatpush3.bf16.msra.mxu1 %v515_v6  ;;  %292 = vbcast.lane.b32.xlu1 %v290_v16, 256 }
   0x9   :  { %492 = vmatmul.mubr.msk.bf16.vlgmr.msra.gmra.mxu0 %vm55_vm1, %v31_v9  ;;  %285 = vbcast.lane.b32.xlu0 %v283_v17, 256  ;;  %v325_v16 = vrot.slane %v616_v13, %v324_v15 }
   0xa   :  { %510 = vset.pattern.permute.xlu0 %v542_v11  ;;  %511 = vset.pattern.permute.xlu1 %v542_v11 }
   0xb   :  { %500 = vmatmul.mubr.msk.bf16.vlgmr.msra.gmra.mxu1 %vm55_vm1, %v517_v10 }
   0xc   :  { %503 = vmatprep.mubr.msk.bf16.mxu1 %vm55_vm1, %v518_v12  ;;  %299 = vbcast.lane.b32.xlu1 %v297_v18, 256  ;;  %v331_v12 = vsub.s32 7, %v590_v4 }
   0xd   :  { %313 = vbcast.lane.b32.xlu0 %v311_v20, 256 }
   0xe   :  { %v332_v14 = vrot.slane %v616_v13, %v331_v12 }
  0x10   :  { %306 = vbcast.lane.b32.xlu1 %v304_v22, 256 }
  0x13   :  { %504 = vmatmul.mubr.msk.bf16.gmra.mxu1 %vm55_vm1, %v519_v21 }
  0x14   :  { %320 = vbcast.lane.b32.xlu1 %v318_v24, 256 }
  0x7a   :  { %v293_v17 = vpop.permute.xlu1 %292 }
  0x7b   :  { %v286_v20 = vpop.permute.xlu0 %285 }
  0x7e   :  { %v300_v18 = vpop.permute.xlu1 %299 }
  0x7f   :  { %v314_v22 = vpop.permute.xlu0 %313 }
  0x82   :  { %v307_v19 = vpop.permute.xlu1 %306 }
  0x86   :  { %v321_v21 = vpop.permute.xlu1 %320 }
  0xc9   :  { %v93_v26 = vpop.f32.mrf.mxu0 }
  0xca   :  { %v94_v27 = vadd.f32 %v463_v25, %v93_v26 }
  0xcb   :  { %v501_v28 = vpop.f32.mrf.mxu1  ;;  %v493_v29 = vpop.f32.mrf.mxu0 }
  0xcc   :  { %99 = vst.msk [vmem:[#allocation2] sm:$0xff] %vm55_vm1, %v94_v27 }
  0xcd   :  { %v191_v30 = vpop.f32.mrf.mxu1  ;;  %v96_v31 = vpop.f32.mrf.mxu0 }
  0xcf   :  { %v502_v32 = vpop.f32.mrf.mxu1  ;;  %v494_v33 = vpop.f32.mrf.mxu0 }
  0xd1   :  { %v194_v34 = vpop.f32.mrf.mxu1 }
  0xd3   :  { %v222_v35 = vld [vmem:[#allocation2] sm:$0xff]  ;;  %v505_v36 = vpop.f32.mrf.mxu1 }
  0xd4   :  { %v225_v37 = vadd.f32 %v501_v28, %v222_v35  ;;  %v223_v38 = vadd.f32 %v222_v35, %v191_v30  ;;  %v226_v39 = vadd.f32 %v502_v32, %v222_v35  ;;  %v224_v40 = vadd.f32 %v222_v35, %v194_v34 }
  0xd5   :  { %v207_v41 = vpop.f32.mrf.mxu1  ;;  %v229_v42 = vadd.f32 %v505_v36, %v222_v35 }
  0xd6   :  { %520 = vtanh.f32 %v225_v37  ;;  %v227_v47 = vadd.f32 %v222_v35, %v207_v41 }
  0xd7   :  { %522 = vtanh.f32 %v223_v38  ;;  %v506_v43 = vpop.f32.mrf.mxu1 }
  0xd8   :  { %524 = vtanh.f32 %v226_v39  ;;  %v230_v44 = vadd.f32 %v506_v43, %v222_v35 }
  0xd9   :  { %526 = vtanh.f32 %v224_v40  ;;  %v210_v45 = vpop.f32.mrf.mxu1  ;;  %v385_v40 = vand.u32 127, %v280_v0 }
  0xda   :  { %v228_v46 = vadd.f32 %v222_v35, %v210_v45  ;;  %528 = vtanh.f32 %v229_v42 }
  0xdb   :  { %530 = vtanh.f32 %v230_v44  ;;  %v388_v42 = vsub.s32 %v385_v40, %v590_v4 }
  0xdc   :  { %532 = vtanh.f32 %v228_v46 }
  0xdd   :  { %534 = vtanh.f32 %v227_v47 }
  0xe3   :  { %v521_v49 = vpop.eup %520 }
  0xe4   :  { %v523_v50 = vpop.eup %522  ;;  %v248_v51 = vmul.f32 %v521_v49, %v477_v48 }
  0xe5   :  { %v525_v52 = vpop.eup %524  ;;  %v246_v53 = vmul.f32 %v523_v50, %v477_v48 }
  0xe6   :  { %v527_v54 = vpop.eup %526  ;;  %v260_v55 = vsel %vm55_vm1, %v248_v51, 0.0  ;;  %v249_v56 = vmul.f32 %v525_v52, %v477_v48 }
  0xe7   :  { %261 = vadd.xlane.f32.xlu1 %v260_v55  ;;  %v254_v57 = vsel %vm55_vm1, %v246_v53, 0.0  ;;  %v247_v58 = vmul.f32 %v527_v54, %v477_v48  ;;  %v529_v59 = vpop.eup %528 }
  0xe8   :  { %255 = vadd.xlane.f32.xlu0 %v254_v57  ;;  %v531_v60 = vpop.eup %530  ;;  %v263_v61 = vsel %vm55_vm1, %v249_v56, 0.0  ;;  %v252_v2 = vmul.f32 %v529_v59, %v477_v48 }
  0xe9   :  { %v253_v62 = vmul.f32 %v531_v60, %v477_v48  ;;  %v533_v63 = vpop.eup %532  ;;  %v257_v1 = vsel %vm55_vm1, %v247_v58, 0.0 }
  0xea   :  { %v535_v3 = vpop.eup %534  ;;  %v251_v6 = vmul.f32 %v533_v63, %v477_v48  ;;  %v272_v7 = vsel %vm55_vm1, %v252_v2, 0.0 }
  0xeb   :  { %264 = vadd.xlane.f32.xlu1 %v263_v61  ;;  %v275_v5 = vsel %vm55_vm1, %v253_v62, 0.0  ;;  %v250_v8 = vmul.f32 %v535_v3, %v477_v48 }
  0xec   :  { %258 = vadd.xlane.f32.xlu0 %v257_v1  ;;  %v269_v9 = vsel %vm55_vm1, %v251_v6, 0.0 }
  0xed   :  { %v266_v10 = vsel %vm55_vm1, %v250_v8, 0.0 }
  0xef   :  { %276 = vadd.xlane.f32.xlu1 %v275_v5 }
  0xf0   :  { %273 = vadd.xlane.f32.xlu0 %v272_v7 }
  0xf3   :  { %270 = vadd.xlane.f32.xlu1 %v269_v9 }
  0xf4   :  { %267 = vadd.xlane.f32.xlu0 %v266_v10 }
 0x104   :  { %334 = vbcast.lane.b32.xlu1 %v332_v14, 256 }
 0x10a   :  { %327 = vbcast.lane.b32.xlu0 %v325_v16, 256 }
 0x170   :  { %v262_v23 = vpop.xlane.xlu1 %261 }
 0x171   :  { %v256_v24 = vpop.xlane.xlu0 %255  ;;  %v346_v13 = vadd.f32 %v300_v18, %v262_v23 }
 0x172   :  { %v344_v25 = vadd.f32 %v286_v20, %v256_v24 }
 0x174   :  { %361 = vperm.xlu0 %510, %v344_v25   ;;  %v265_v26 = vpop.xlane.xlu1 %264 }
 0x175   :  { %v347_v27 = vadd.f32 %v307_v19, %v265_v26  ;;  %v259_v28 = vpop.xlane.xlu0 %258 }
 0x176   :  { %v345_v29 = vadd.f32 %v293_v17, %v259_v28 }
 0x178   :  { %370 = vperm.xlu0 %510, %v347_v27   ;;  %364 = vperm.xlu1 %511, %v345_v29   ;;  %v277_v30 = vpop.xlane.xlu1 %276 }
 0x179   :  { %v274_v31 = vpop.xlane.xlu0 %273 }
 0x17c   :  { %367 = vperm.xlu1 %511, %v346_v13   ;;  %v271_v32 = vpop.xlane.xlu1 %270 }
 0x17d   :  { %v349_v33 = vadd.f32 %v321_v21, %v271_v32  ;;  %v268_v34 = vpop.xlane.xlu0 %267 }
 0x17e   :  { %v348_v35 = vadd.f32 %v314_v22, %v268_v34 }
 0x17f   :  { %376 = vperm.xlu0 %510, %v349_v33  }
 0x180   :  { %373 = vperm.xlu1 %511, %v348_v35   ;;  %v335_v36 = vpop.permute.xlu1 %334 }
 0x181   :  { %v351_v37 = vadd.f32 %v335_v36, %v277_v30  ;;  %v328_v38 = vpop.permute.xlu0 %327 }
 0x182   :  { %v350_v39 = vadd.f32 %v328_v38, %v274_v31 }
 0x183   :  { %382 = vperm.xlu0 %510, %v351_v37  }
 0x184   :  { %379 = vperm.xlu1 %511, %v350_v39  }
 0x1ef   :  { %v362_v41 = vpop.permute.xlu0 %361 }
 0x1f0   :  { %v389_v46 = vrot.slane %v362_v41, %v388_v42 }
 0x1f3   :  { %v365_v43 = vpop.permute.xlu1 %364  ;;  %v371_v45 = vpop.permute.xlu0 %370 }
 0x1f4   :  { %v393_v44 = vrot.slane %v365_v43, %v388_v42  ;;  %v401_v52 = vrot.slane %v371_v45, %v388_v42 }
 0x1f6   :  { %v419_v49 = vsel %vm418_vm2, %v393_v44, %v389_v46 }
 0x1f7   :  { %v368_v47 = vpop.permute.xlu1 %367 }
 0x1f8   :  { %v397_v48 = vrot.slane %v368_v47, %v388_v42 }
 0x1fa   :  { %v421_v50 = vsel %vm420_vm3, %v397_v48, %v419_v49  ;;  %v377_v51 = vpop.permute.xlu0 %376 }
 0x1fb   :  { %v374_v53 = vpop.permute.xlu1 %373  ;;  %v423_v0 = vsel %vm422_vm4, %v401_v52, %v421_v50  ;;  %v409_v55 = vrot.slane %v377_v51, %v388_v42 }
 0x1fc   :  { %v405_v54 = vrot.slane %v374_v53, %v388_v42 }
 0x1fe   :  { %v425_v56 = vsel %vm424_vm5, %v405_v54, %v423_v0  ;;  %v383_v4 = vpop.permute.xlu0 %382 }
 0x1ff   :  { %v380_v57 = vpop.permute.xlu1 %379  ;;  %v417_v58 = vrot.slane %v383_v4, %v388_v42  ;;  %v427_v60 = vsel %vm426_vm6, %v409_v55, %v425_v56 }
 0x200   :  { %v413_v59 = vrot.slane %v380_v57, %v388_v42 }
 0x202   :  { %v429_v61 = vsel %vm428_vm7, %v413_v59, %v427_v60 }
 0x203   :  { %v431_v62 = vsel %vm430_vm8, %v417_v58, %v429_v61 }
 0x204   :  { %434 = vst.msk [vmem:[%s676_s7] sm:$0xff] %vm433_vm9, %v431_v62 }
 0x20b   :  { %v438_v63 = vld [vmem:[%s676_s7] sm:$0xff] }
 0x20c   :  { %v439_v1 = vsel %vm433_vm9, %v438_v63, -inf }
 0x20d   :  { %v440_v2 = vrot.slane %v439_v1, 4 }
 0x20f   :  { %v441_v3 = vmax.f32 %v439_v1, %v440_v2 }
 0x211   :  { %v442_v5 = vrot.slane %v441_v3, 2 }
 0x213   :  { %v443_v6 = vmax.f32 %v441_v3, %v442_v5 }
 0x215   :  { %v444_v7 = vrot.slane %v443_v6, 1 }
 0x217   :  { %v445_v8 = vmax.f32 %v443_v6, %v444_v7 }
 0x219   :  { %v446_v9 = vsub.f32 %v438_v63, %v445_v8 }
 0x21b   :  { %v447_v10 = vmul.f32 1.442695, %v446_v9 }
 0x21d   :  { %536 = vpow2.f32 %v447_v10 }
 0x22a   :  { %v537_v11 = vpop.eup %536 }
 0x22b   :  { %v449_v12 = vsel %vm433_vm9, %v537_v11, 0.0 }
 0x22c   :  { %v450_v14 = vrot.slane %v449_v12, 4 }
 0x22e   :  { %v451_v15 = vadd.f32 %v450_v14, %v449_v12 }
 0x230   :  { %v452_v16 = vrot.slane %v451_v15, 2 }
 0x232   :  { %v453_v17 = vadd.f32 %v452_v16, %v451_v15 }
 0x234   :  { %v454_v18 = vrot.slane %v453_v17, 1 }
 0x236   :  { %v455_v19 = vadd.f32 %v454_v18, %v453_v17 }
 0x238   :  { %538 = vrcp.f32 %v455_v19 }
 0x245   :  { %v539_v20 = vpop.eup %538 }
 0x246   :  { %v457_v21 = vmul.f32 %v539_v20, %v537_v11 }
 0x248   :  { %458 = vst.msk [vmem:[%s676_s7] sm:$0xff] %vm433_vm9, %v457_v21 }

</bundles_post_ra>
